<compile_context>
chip_gen: v7x
topology: tpu7x:2x2x1
jax: 0.10.0
libtpu: 0.0.40
codegen_flags: <defaults>
</compile_context>

<pallas_src>
import math

import jax
import jax.numpy as jnp
from jax.experimental import pallas as pl
from jax.experimental.pallas import tpu as pltpu


def _embedding_kernel(ids_ref, emb_ref, out_ref):
    """Embed TN tokens: one-hot (V, TN) built in-kernel, contracted on the MXU.

    ids_ref : (1, 1, TN) int32 — token ids for this tile (tokens along lanes)
    emb_ref : (V, D)           — full embedding table (VMEM resident, single buffer)
    out_ref : (1, TN, D)       — row-major embeddings for this tile
    """
    V = emb_ref.shape[0]
    ids = ids_ref[0]                                   # (1, TN) int32
    tn = ids.shape[-1]

    # In-kernel vocab iota (VPU work that hides under the matmul); one-hot is
    # built directly in the table dtype (bf16 on v6e/v7x).
    vocab = jax.lax.broadcasted_iota(jnp.int32, (V, tn), 0)
    onehot = (vocab == ids).astype(emb_ref.dtype)      # (V, TN)

    # out[t, d] = sum_v onehot[v, t] * E[v, d] — bf16 MXU, f32 accumulation.
    out = jax.lax.dot_general(
        onehot, emb_ref[...],
        dimension_numbers=(((0,), (0,)), ((), ())),
        preferred_element_type=jnp.float32)            # (TN, D)
    out_ref[0] = out.astype(out_ref.dtype)


def embedding_forward(x, emb_table, *, tile_tokens=512):
    """Pallas equivalent of nn.Embedding forward: emb_table[x].

    x may have any shape of integer ids; output has shape x.shape + (D,) and
    the table's dtype.
    """
    V, D = emb_table.shape
    TN = tile_tokens

    N = math.prod(x.shape)
    n_pad = (-N) % TN
    N_pad = N + n_pad
    num_tiles = N_pad // TN
    ids_flat = jnp.pad(x.reshape(-1).astype(jnp.int32), (0, n_pad))
    # (num_tiles, 1, TN): trailing block dims are (1, TN) -> (full-dim, 128k),
    # satisfying TPU block-shape constraints; tokens ride the lane dimension.
    ids_tiled = ids_flat.reshape(num_tiles, 1, TN)

    # Explicit VMEM budget: resident table + double-buffered ids/out tiles +
    # one-hot / int32 compare / f32 matmul intermediates, 1.5x headroom,
    # floored at 16 MiB (<= the default scoped limit on v5e/v6e/v7x) so small
    # configs never under-provision.
    esize = jnp.dtype(emb_table.dtype).itemsize
    budget = (V * D * esize                 # resident table (single buffer)
              + 2 * TN * 4                  # ids tiles (double buffered)
              + 2 * TN * D * esize          # out tiles (double buffered)
              + V * TN * (esize + 4)        # one-hot + int32 iota/compare
              + TN * D * 4)                 # f32 matmul result
    vmem_limit = max(int(budget * 1.5) + (1 << 20), 16 * 1024 * 1024)

    out = pl.pallas_call(
        _embedding_kernel,
        out_shape=jax.ShapeDtypeStruct((num_tiles, TN, D), emb_table.dtype),
        grid=(num_tiles,),
        in_specs=[
            # per-tile token ids (pipelined, double-buffered)
            pl.BlockSpec((1, 1, TN), lambda i: (i, 0, 0)),
            # whole embedding table, VMEM resident for the whole kernel
            pl.BlockSpec(memory_space=pltpu.MemorySpace.VMEM),
        ],
        out_specs=pl.BlockSpec((1, TN, D), lambda i: (i, 0, 0)),
        compiler_params=pltpu.CompilerParams(
            dimension_semantics=("parallel",),
            vmem_limit_bytes=vmem_limit),
    )(ids_tiled, emb_table)

    # Only free, contiguous reshapes/slices from here on — no transpose, no
    # extra HBM pass over the result.
    out = out.reshape(N_pad, D)[:N]
    return out.reshape(*x.shape, D)


class SimpleEmbeddingEncoder:
    """JAX/Pallas port of the PyTorch SimpleEmbeddingEncoder."""

    def __init__(self, vocab_size: int, embedding_dim: int, key,
                 *, param_dtype=jnp.bfloat16):
        self.vocab_size = vocab_size
        self.embedding_dim = embedding_dim
        # nn.Embedding default init: N(0, 1).  Stored in bf16 (per perf review)
        # so the one-hot contraction runs on the native bf16 MXU; the 0/1 mask
        # keeps the kernel output bit-exact vs. a gather from this bf16 table.
        self.embedding = jax.random.normal(
            key, (vocab_size, embedding_dim), dtype=jnp.float32).astype(param_dtype)

    def __call__(self, x):
        return embedding_forward(x, self.embedding)


if __name__ == "__main__":
    vocab_size = 256
    embedding_dim = 32
    batch, seq = 8, 128          # 1024 tokens -> 2 even tiles of 512 (v7x-friendly)

    key = jax.random.PRNGKey(0)
    k_ids, k_emb = jax.random.split(key)

    x = jax.random.randint(k_ids, (batch, seq), 0, vocab_size, dtype=jnp.int32)

    encoder = SimpleEmbeddingEncoder(vocab_size, embedding_dim, k_emb)

    out = jax.block_until_ready(encoder(x))

    # reference check: plain gather from the same (bf16) table
    ref = encoder.embedding[x]
    assert out.shape == (batch, seq, embedding_dim)
    assert out.dtype == encoder.embedding.dtype
    assert jnp.allclose(out.astype(jnp.float32), ref.astype(jnp.float32),
                        rtol=1e-3, atol=1e-3), "Pallas embedding mismatch vs reference"

    print("KERNEL_OK")
</pallas_src>

<mosaic_0001>
module attributes {stable_mosaic.version = 11 : i64} {
  func.func @_embedding_kernel(%arg0: i32, %arg1: memref<1x1x512xi32, #tpu.memory_space<vmem>>, %arg2: memref<256x32xbf16, #tpu.memory_space<vmem>>, %arg3: memref<1x512x32xbf16, #tpu.memory_space<vmem>>) attributes {dimension_semantics = [#tpu.dimension_semantics<parallel>], iteration_bounds = array<i64: 2>, scalar_prefetch = 0 : i64, scratch_operands = 0 : i64, tpu.core_type = #tpu.core_type<tc>, window_params = [{transform_indices = @transform_0, window_bounds = array<i64: 1, 1, 512>}, {pipeline_mode = #tpu.pipeline_mode<synchronous>, transform_indices = @transform_1, window_bounds = array<i64: 256, 32>}, {transform_indices = @transform_2, window_bounds = array<i64: 1, 512, 32>}]} {
    %c0 = arith.constant 0 : index
    %c0_0 = arith.constant 0 : index
    %c0_1 = arith.constant 0 : index
    %0 = vector.load %arg1[%c0, %c0_0, %c0_1] : memref<1x1x512xi32, #tpu.memory_space<vmem>>, vector<1x1x512xi32>
    %1 = vector.shape_cast %0 : vector<1x1x512xi32> to vector<1x512xi32>
    %2 = tpu.iota {dimensions = array<i32: 0>} : vector<256x512xi32>
    %3 = vector.broadcast %1 : vector<1x512xi32> to vector<256x512xi32>
    %4 = arith.cmpi eq, %2, %3 : vector<256x512xi32>
    %5 = arith.extui %4 : vector<256x512xi1> to vector<256x512xi32>
    %6 = arith.sitofp %5 : vector<256x512xi32> to vector<256x512xf32>
    %7 = arith.truncf %6 : vector<256x512xf32> to vector<256x512xbf16>
    %c0_2 = arith.constant 0 : index
    %c0_3 = arith.constant 0 : index
    %8 = vector.load %arg2[%c0_2, %c0_3] : memref<256x32xbf16, #tpu.memory_space<vmem>>, vector<256x32xbf16>
    %cst = arith.constant dense<0.000000e+00> : vector<512x32xf32>
    %9 = tpu.matmul %7, %8, %cst {dimension_numbers = #tpu.dot_dimension_numbers<[0], [0], [1], [1], [0, 1, 1, 1], [], []>} : vector<256x512xbf16>, vector<256x32xbf16>, vector<512x32xf32> -> vector<512x32xf32>
    %10 = arith.truncf %9 : vector<512x32xf32> to vector<512x32xbf16>
    %c0_4 = arith.constant 0 : index
    %c0_5 = arith.constant 0 : index
    %c0_6 = arith.constant 0 : index
    %11 = vector.load %arg3[%c0_4, %c0_5, %c0_6] : memref<1x512x32xbf16, #tpu.memory_space<vmem>>, vector<1x512x32xbf16>
    %12 = vector.shape_cast %11 : vector<1x512x32xbf16> to vector<512x32xbf16>
    %13 = vector.shape_cast %10 : vector<512x32xbf16> to vector<1x512x32xbf16>
    tpu.vector_store %arg3[%c0_4, %c0_5, %c0_6], %13 {strides = array<i32>} : memref<1x512x32xbf16, #tpu.memory_space<vmem>>, vector<1x512x32xbf16>,
    return
  }
  func.func @transform_0(%arg0: i32) -> (i32, i32, i32) {
    %c0_i32 = arith.constant 0 : i32
    %c0_i32_0 = arith.constant 0 : i32
    %c0_i32_1 = arith.constant 0 : i32
    return %arg0, %c0_i32, %c0_i32_0 : i32, i32, i32
  }
  func.func @transform_1(%arg0: i32) -> (i32, i32) {
    %c0_i32 = arith.constant 0 : i32
    %c0_i32_0 = arith.constant 0 : i32
    %c0_i32_1 = arith.constant 0 : i32
    return %c0_i32, %c0_i32_0 : i32, i32
  }
  func.func @transform_2(%arg0: i32) -> (i32, i32, i32) {
    %c0_i32 = arith.constant 0 : i32
    %c0_i32_0 = arith.constant 0 : i32
    %c0_i32_1 = arith.constant 0 : i32
    return %arg0, %c0_i32, %c0_i32_0 : i32, i32, i32
  }
}

</mosaic_0001>

<bundles_post_ra>
// kernel: tpu_custom_call.1
= control target key start
LH: loop header
LB: loop body
LE: loop exit
PB: predicated region body
PF: predicated region fallthrough
CT: control target
= control target key end

     0   :  { %s1927_s9 = smov 0   ;;  %s3033_s0 = inlined_call_operand.vmem [shape: s32[2,1,512], index: 0, kind: input, shape index: {}]   ;;  %s3034_s1 = inlined_call_operand.vmem [shape: bf16[256,32], index: 1, kind: input, shape index: {}]   ;;  %s3035_s2 = inlined_call_operand.vmem [shape: bf16[2,512,32], index: 2, kind: output, shape index: {}]  }
   0x1 LB: > { %s1561_s10 = sadd.s32 4294967295, %s1908_s9   ;;  %p1565_p0 = scmp.ge.s32.totalorder %s1908_s9, 1  ;;  %s1908_s9 = sphi %s1927_s9, %s12_s9  }
   0x2   : > { %p111_p1 = scmp.lt.s32.totalorder %s1908_s9, 3 }
   0x4   : > { %p112_p2 = pnand %p1565_p0, %p111_p1 }
   0x6   : > { %115 = sbr.rel (%p112_p2) target bundleno = 499 (0x1f3), region = 28 }
   0xd   : > { %p132_p3 = scmp.lt.s32.totalorder %s1561_s10, 1  ;;  %v143_v0 = vlaneseq  ;;  %v1886_v1 = vld [vmem:[%s3034_s1] sm:$0xff]   ;;  %v3038_v2 = vmov 0   ;;  %v1887_v4 = vld [vmem:[%s3034_s1 + $0x8] sm:$0xff]   ;;  %v1888_v7 = vld [vmem:[%s3034_s1 + $0x10] sm:$0xff]   ;;  %v3036_v25 = vmov 0.0  }
   0xe   : > { %896 = vmatprep.subr.bf16.mxu0 %v3038_v2  ;;  %1844 = vmatprep.subr.bf16.mxu1 %v3038_v2  ;;  %v1889_v30 = vld [vmem:[%s3034_s1 + $0x18] sm:$0xff]   ;;  %v1890_v40 = vld [vmem:[%s3034_s1 + $0x20] sm:$0xff]   ;;  %v1891_v48 = vld [vmem:[%s3034_s1 + $0x28] sm:$0xff]  }
   0xf   : > { %s3065_s10 = smov (!%p132_p3, %s1561_s10), 1  ;;  %v1942_v3 = vshrl.u32 %v143_v0, 7  ;;  %897 = vmatpush1.bf16.msra.mxu0 %v1886_v1  ;;  %1860 = vmatpush1.bf16.msra.mxu1 %v1886_v1  ;;  %v1892_v60 = vld [vmem:[%s3034_s1 + $0x30] sm:$0xff]  }
  0x10   : > { %898 = vmatprep.subr.bf16.mxu0 %v3038_v2  ;;  %1845 = vmatprep.subr.bf16.mxu1 %v3038_v2  ;;  %s1566_s15 = sshll.u32 %s3065_s10, 2  ;;  %s1779_s21 = sshll.u32 %s3065_s10, 8 }
  0x11   : > { %v186_v5 = vsub.s32 2, %v1942_v3  ;;  %v178_v6 = vsub.s32 0, %v1942_v3  ;;  %s135_s20 = scalar_lea.vmem %s3033_s0, %s1566_s15  ;;  %v1959_v8 = vadd.s32 128, %v1942_v3  ;;  %v1962_v9 = vadd.s32 136, %v1942_v3  ;;  %s2900_s24 = scalar_lea.vmem %s3035_s2, %s1779_s21 }
  0x12   : > { %v1965_v10 = vadd.s32 144, %v1942_v3  ;;  %v1968_v11 = vadd.s32 152, %v1942_v3  ;;  %v1970_v12 = vld [vmem:[%s135_s20] sm:$0xf]  ;;  %v1973_v13 = vadd.s32 160, %v1942_v3  ;;  %v1976_v14 = vadd.s32 168, %v1942_v3 }
  0x13   : > { %v1979_v15 = vadd.s32 176, %v1942_v3  ;;  %v1982_v16 = vadd.s32 184, %v1942_v3  ;;  %899 = vmatpush1.bf16.msra.mxu0 %v1887_v4  ;;  %1861 = vmatpush1.bf16.msra.mxu1 %v1887_v4  ;;  %v1985_v17 = vrot.slane %v1970_v12, %v186_v5  ;;  %v1988_v18 = vrot.slane %v1970_v12, %v178_v6 }
  0x14   : > { %v1991_v19 = vadd.s32 192, %v1942_v3  ;;  %v1994_v20 = vadd.s32 200, %v1942_v3  ;;  %900 = vmatprep.subr.bf16.mxu0 %v3038_v2  ;;  %1846 = vmatprep.subr.bf16.mxu1 %v3038_v2  ;;  %v1999_v21 = vadd.s32 208, %v1942_v3  ;;  %v2002_v22 = vadd.s32 216, %v1942_v3 }
  0x15   : > { %v2005_v23 = vadd.s32 224, %v1942_v3  ;;  %v2008_v24 = vadd.s32 232, %v1942_v3  ;;  %vm258_vm0 = vcmp.eq.s32.totalorder %v1959_v8, %v1985_v17  ;;  %vm262_vm1 = vcmp.eq.s32.totalorder %v1962_v9, %v1985_v17 }
  0x16   : > { %vm256_vm2 = vcmp.eq.s32.totalorder %v1959_v8, %v1988_v18  ;;  %vm260_vm3 = vcmp.eq.s32.totalorder %v1962_v9, %v1988_v18  ;;  %v1635_v26 = vsel %vm258_vm0, 1.0, %v3036_v25  ;;  %v1639_v27 = vsel %vm262_vm1, 1.0, %v3036_v25 }
  0x17   : > { %v1633_v28 = vsel %vm256_vm2, 1.0, %v3036_v25  ;;  %v1637_v29 = vsel %vm260_vm3, 1.0, %v3036_v25  ;;  %901 = vmatpush1.bf16.msra.mxu0 %v1888_v7  ;;  %1862 = vmatpush1.bf16.msra.mxu1 %v1888_v7  ;;  %v610_v31 = vpack.c.bf16 %v1639_v27, %v1635_v26  ;;  %vm266_vm4 = vcmp.eq.s32.totalorder %v1965_v10, %v1985_v17  ;;  %v1893_v27 = vld [vmem:[%s3034_s1 + $0x38] sm:$0xff]  }
  0x18   : > { %v608_v32 = vpack.c.bf16 %v1637_v29, %v1633_v28  ;;  %vm270_vm5 = vcmp.eq.s32.totalorder %v1968_v11, %v1985_v17  ;;  %902 = vmatprep.subr.bf16.mxu0 %v3038_v2  ;;  %v1643_v33 = vsel %vm266_vm4, 1.0, %v3036_v25  ;;  %vm264_vm6 = vcmp.eq.s32.totalorder %v1965_v10, %v1988_v18  ;;  %1847 = vmatprep.subr.bf16.mxu1 %v3038_v2 }
  0x19   : > { %v1647_v34 = vsel %vm270_vm5, 1.0, %v3036_v25  ;;  %vm268_vm7 = vcmp.eq.s32.totalorder %v1968_v11, %v1988_v18  ;;  %768 = vxpose.xlu1.c.b16.start [1/8] %v610_v31, 128  ;;  %v1641_v36 = vsel %vm264_vm6, 1.0, %v3036_v25  ;;  %vm274_vm8 = vcmp.eq.s32.totalorder %v1973_v13, %v1985_v17 }
  0x1a   : > { %736 = vxpose.xlu0.c.b16.start [1/8] %v608_v32, 128  ;;  %v614_v35 = vpack.c.bf16 %v1647_v34, %v1643_v33  ;;  %v1645_v37 = vsel %vm268_vm7, 1.0, %v3036_v25  ;;  %vm278_vm9 = vcmp.eq.s32.totalorder %v1976_v14, %v1985_v17  ;;  %v1651_v39 = vsel %vm274_vm8, 1.0, %v3036_v25 }
  0x1b   : > { %v612_v38 = vpack.c.bf16 %v1645_v37, %v1641_v36  ;;  %vm272_vm10 = vcmp.eq.s32.totalorder %v1973_v13, %v1988_v18  ;;  %903 = vmatpush1.bf16.msra.mxu0 %v1889_v30  ;;  %1863 = vmatpush1.bf16.msra.mxu1 %v1889_v30  ;;  %v1655_v41 = vsel %vm278_vm9, 1.0, %v3036_v25  ;;  %vm276_vm11 = vcmp.eq.s32.totalorder %v1976_v14, %v1988_v18 }
  0x1c   : > { %v1649_v42 = vsel %vm272_vm10, 1.0, %v3036_v25  ;;  %vm282_vm12 = vcmp.eq.s32.totalorder %v1979_v15, %v1985_v17  ;;  %904 = vmatprep.subr.bf16.mxu0 %v3038_v2  ;;  %1848 = vmatprep.subr.bf16.mxu1 %v3038_v2  ;;  %v618_v43 = vpack.c.bf16 %v1655_v41, %v1651_v39  ;;  %v1653_v44 = vsel %vm276_vm11, 1.0, %v3036_v25 }
  0x1d   : > { %vm286_vm13 = vcmp.eq.s32.totalorder %v1982_v16, %v1985_v17  ;;  %v1659_v45 = vsel %vm282_vm12, 1.0, %v3036_v25  ;;  %769 = vxpose.xlu1.c.b16.cont [2/8] %v614_v35, 128  ;;  %v616_v46 = vpack.c.bf16 %v1653_v44, %v1649_v42  ;;  %vm280_vm14 = vcmp.eq.s32.totalorder %v1979_v15, %v1988_v18 }
  0x1e   : > { %737 = vxpose.xlu0.c.b16.cont [2/8] %v612_v38, 128  ;;  %v1663_v47 = vsel %vm286_vm13, 1.0, %v3036_v25  ;;  %vm284_vm15 = vcmp.eq.s32.totalorder %v1982_v16, %v1988_v18  ;;  %v1657_v49 = vsel %vm280_vm14, 1.0, %v3036_v25  ;;  %vm290_vm0 = vcmp.eq.s32.totalorder %v1991_v19, %v1985_v17  ;;  %v1894_v38 = vld [vmem:[%s3034_s1 + $0x40] sm:$0xff]  }
  0x1f   : > { %v1661_v50 = vsel %vm284_vm15, 1.0, %v3036_v25  ;;  %905 = vmatpush1.bf16.msra.mxu0 %v1890_v40  ;;  %1864 = vmatpush1.bf16.msra.mxu1 %v1890_v40  ;;  %vm294_vm1 = vcmp.eq.s32.totalorder %v1994_v20, %v1985_v17  ;;  %vm288_vm2 = vcmp.eq.s32.totalorder %v1991_v19, %v1988_v18  ;;  %v2078_v51 = vadd.s32 240, %v1942_v3 }
  0x20   : > { %v2081_v52 = vadd.s32 248, %v1942_v3  ;;  %906 = vmatprep.subr.bf16.mxu0 %v3038_v2  ;;  %1849 = vmatprep.subr.bf16.mxu1 %v3038_v2  ;;  %v622_v53 = vpack.c.bf16 %v1663_v47, %v1659_v45  ;;  %v620_v54 = vpack.c.bf16 %v1661_v50, %v1657_v49  ;;  %vm292_vm3 = vcmp.eq.s32.totalorder %v1994_v20, %v1988_v18 }
  0x21   : > { %vm298_vm4 = vcmp.eq.s32.totalorder %v1999_v21, %v1985_v17  ;;  %770 = vxpose.xlu1.c.b16.cont [3/8] %v618_v43, 128  ;;  %v1667_v55 = vsel %vm290_vm0, 1.0, %v3036_v25  ;;  %v1671_v56 = vsel %vm294_vm1, 1.0, %v3036_v25  ;;  %v1665_v57 = vsel %vm288_vm2, 1.0, %v3036_v25 }
  0x22   : > { %738 = vxpose.xlu0.c.b16.cont [3/8] %v616_v46, 128  ;;  %vm302_vm5 = vcmp.eq.s32.totalorder %v2002_v22, %v1985_v17  ;;  %v1669_v58 = vsel %vm292_vm3, 1.0, %v3036_v25  ;;  %v1675_v59 = vsel %vm298_vm4, 1.0, %v3036_v25  ;;  %vm296_vm6 = vcmp.eq.s32.totalorder %v1999_v21, %v1988_v18 }
  0x23   : > { %vm300_vm7 = vcmp.eq.s32.totalorder %v2002_v22, %v1988_v18  ;;  %907 = vmatpush1.bf16.msra.mxu0 %v1891_v48  ;;  %1865 = vmatpush1.bf16.msra.mxu1 %v1891_v48  ;;  %v1679_v61 = vsel %vm302_vm5, 1.0, %v3036_v25  ;;  %v1673_v62 = vsel %vm296_vm6, 1.0, %v3036_v25  ;;  %vm306_vm8 = vcmp.eq.s32.totalorder %v2005_v23, %v1985_v17 }
  0x24   : > { %v1677_v63 = vsel %vm300_vm7, 1.0, %v3036_v25  ;;  %908 = vmatprep.subr.bf16.mxu0 %v3038_v2  ;;  %1850 = vmatprep.subr.bf16.mxu1 %v3038_v2  ;;  %v626_v0 = vpack.c.bf16 %v1671_v56, %v1667_v55  ;;  %vm310_vm9 = vcmp.eq.s32.totalorder %v2008_v24, %v1985_v17  ;;  %v2113_v1 = vsel %vm306_vm8, 1.0, %v3036_v25 }
  0x25   : > { %vm304_vm10 = vcmp.eq.s32.totalorder %v2005_v23, %v1988_v18  ;;  %771 = vxpose.xlu1.c.b16.cont [4/8] %v622_v53, 128  ;;  %v624_v4 = vpack.c.bf16 %v1669_v58, %v1665_v57  ;;  %v2118_v5 = vsel %vm310_vm9, 1.0, %v3036_v25  ;;  %vm308_vm11 = vcmp.eq.s32.totalorder %v2008_v24, %v1988_v18  ;;  %v1895_v53 = vld [vmem:[%s3034_s1 + $0x48] sm:$0xff]  }
  0x26   : > { %739 = vxpose.xlu0.c.b16.cont [4/8] %v620_v54, 128  ;;  %vm314_vm12 = vcmp.eq.s32.totalorder %v2078_v51, %v1985_v17  ;;  %v630_v6 = vpack.c.bf16 %v1679_v61, %v1675_v59  ;;  %v628_v7 = vpack.c.bf16 %v1677_v63, %v1673_v62  ;;  %v1681_v26 = vsel %vm304_vm10, 1.0, %v3036_v25 }
  0x27   : > { %vm318_vm13 = vcmp.eq.s32.totalorder %v2081_v52, %v1985_v17  ;;  %909 = vmatpush1.bf16.msra.mxu0 %v1892_v60  ;;  %1866 = vmatpush1.bf16.msra.mxu1 %v1892_v60  ;;  %v634_v28 = vpack.c.bf16 %v2118_v5, %v2113_v1  ;;  %v1685_v29 = vsel %vm308_vm11, 1.0, %v3036_v25  ;;  %vm312_vm14 = vcmp.eq.s32.totalorder %v2078_v51, %v1988_v18 }
  0x28   : > { %vm316_vm15 = vcmp.eq.s32.totalorder %v2081_v52, %v1988_v18  ;;  %910 = vmatprep.subr.bf16.mxu0 %v3038_v2  ;;  %1851 = vmatprep.subr.bf16.mxu1 %v3038_v2  ;;  %v2140_v30 = vsel %vm314_vm12, 1.0, %v3036_v25  ;;  %v2143_v31 = vsel %vm318_vm13, 1.0, %v3036_v25  ;;  %v2146_v32 = vsel %vm312_vm14, 1.0, %v3036_v25 }
  0x29   : > { %v2149_v33 = vadd.s32 8, %v1942_v3  ;;  %772 = vxpose.xlu1.c.b16.cont [5/8] %v626_v0, 128  ;;  %v2152_v34 = vsel %vm316_vm15, 1.0, %v3036_v25  ;;  %vm194_vm0 = vcmp.eq.s32.totalorder %v1942_v3, %v1985_v17  ;;  %vm192_vm1 = vcmp.eq.s32.totalorder %v1942_v3, %v1988_v18  ;;  %v1896_v0 = vld [vmem:[%s3034_s1 + $0x50] sm:$0xff]  }
  0x2a   : > { %740 = vxpose.xlu0.c.b16.cont [5/8] %v624_v4, 128  ;;  %v2159_v35 = vadd.s32 16, %v1942_v3  ;;  %v632_v36 = vpack.c.bf16 %v1685_v29, %v1681_v26  ;;  %v2164_v37 = vsel %vm194_vm0, 1.0, %v3036_v25  ;;  %v638_v39 = vpack.c.bf16 %v2143_v31, %v2140_v30  ;;  %v1897_v31 = vld [vmem:[%s3034_s1 + $0x58] sm:$0xff]  }
  0x2b   : > { %vm198_vm2 = vcmp.eq.s32.totalorder %v2149_v33, %v1985_v17  ;;  %vm196_vm3 = vcmp.eq.s32.totalorder %v2149_v33, %v1988_v18  ;;  %911 = vmatpush1.bf16.msra.mxu0 %v1893_v27  ;;  %1867 = vmatpush1.bf16.msra.mxu1 %v1893_v27  ;;  %v2177_v41 = vadd.s32 24, %v1942_v3  ;;  %v636_v42 = vpack.c.bf16 %v2152_v34, %v2146_v32 }
  0x2c   : > { %v2174_v40 = vsel %vm198_vm2, 1.0, %v3036_v25  ;;  %vm202_vm4 = vcmp.eq.s32.totalorder %v2159_v35, %v1985_v17  ;;  %912 = vmatprep.subr.bf16.mxu0 %v3038_v2  ;;  %1852 = vmatprep.subr.bf16.mxu1 %v3038_v2  ;;  %v2189_v43 = vsel %vm192_vm1, 1.0, %v3036_v25  ;;  %v2192_v44 = vsel %vm196_vm3, 1.0, %v3036_v25 }
  0x2d   : > { %vm200_vm5 = vcmp.eq.s32.totalorder %v2159_v35, %v1988_v18  ;;  %773 = vxpose.xlu1.c.b16.cont [6/8] %v630_v6, 128  ;;  %v578_v45 = vpack.c.bf16 %v2174_v40, %v2164_v37  ;;  %vm206_vm6 = vcmp.eq.s32.totalorder %v2177_v41, %v1985_v17  ;;  %vm204_vm7 = vcmp.eq.s32.totalorder %v2177_v41, %v1988_v18 }
  0x2e   : > { %741 = vxpose.xlu0.c.b16.cont [6/8] %v628_v7, 128  ;;  %v2203_v46 = vadd.s32 32, %v1942_v3  ;;  %v2206_v47 = vsel %vm202_vm4, 1.0, %v3036_v25  ;;  %v2209_v48 = vsel %vm206_vm6, 1.0, %v3036_v25  ;;  %v2212_v49 = vadd.s32 40, %v1942_v3 }
  0x2f   : > { %v2215_v50 = vadd.s32 48, %v1942_v3  ;;  %913 = vmatpush1.bf16.msra.mxu0 %v1894_v38  ;;  %1868 = vmatpush1.bf16.msra.mxu1 %v1894_v38  ;;  %v2221_v54 = vsel %vm200_vm5, 1.0, %v3036_v25  ;;  %v2224_v55 = vsel %vm204_vm7, 1.0, %v3036_v25  ;;  %v576_v56 = vpack.c.bf16 %v2192_v44, %v2189_v43 }
  0x30   : > { %vm210_vm8 = vcmp.eq.s32.totalorder %v2203_v46, %v1985_v17  ;;  %vm208_vm9 = vcmp.eq.s32.totalorder %v2203_v46, %v1988_v18  ;;  %914 = vmatprep.subr.bf16.mxu0 %v3038_v2  ;;  %vm214_vm10 = vcmp.eq.s32.totalorder %v2212_v49, %v1985_v17  ;;  %vm212_vm11 = vcmp.eq.s32.totalorder %v2212_v49, %v1988_v18 }
  0x31   : > { %v2236_v57 = vsel %vm210_vm8, 1.0, %v3036_v25  ;;  %1853 = vmatprep.subr.bf16.mxu1 %v3038_v2  ;;  %774 = vxpose.xlu1.c.b16.cont [7/8] %v634_v28, 128  ;;  %v582_v58 = vpack.c.bf16 %v2209_v48, %v2206_v47  ;;  %v2244_v59 = vsel %vm214_vm10, 1.0, %v3036_v25  ;;  %v2247_v60 = vadd.s32 56, %v1942_v3 }
  0x32   : > { %742 = vxpose.xlu0.c.b16.cont [7/8] %v632_v36, 128  ;;  %vm218_vm12 = vcmp.eq.s32.totalorder %v2215_v50, %v1985_v17  ;;  %v580_v61 = vpack.c.bf16 %v2224_v55, %v2221_v54  ;;  %v2254_v62 = vsel %vm208_vm9, 1.0, %v3036_v25  ;;  %v2257_v63 = vsel %vm212_vm11, 1.0, %v3036_v25  ;;  %v1899_v54 = vld [vmem:[%s3034_s1 + $0x68] sm:$0xff]  }
  0x33   : > { %vm216_vm13 = vcmp.eq.s32.totalorder %v2215_v50, %v1988_v18  ;;  %915 = vmatpush1.bf16.msra.mxu0 %v1895_v53  ;;  %1869 = vmatpush1.bf16.msra.mxu1 %v1895_v53  ;;  %v586_v1 = vpack.c.bf16 %v2244_v59, %v2236_v57  ;;  %vm222_vm14 = vcmp.eq.s32.totalorder %v2247_v60, %v1985_v17  ;;  %v2271_v4 = vadd.s32 64, %v1942_v3  ;;  %v1900_v57 = vld [vmem:[%s3034_s1 + $0x70] sm:$0xff]  }
  0x34   : > { %vm220_vm15 = vcmp.eq.s32.totalorder %v2247_v60, %v1988_v18  ;;  %916 = vmatprep.subr.bf16.mxu0 %v3038_v2  ;;  %1854 = vmatprep.subr.bf16.mxu1 %v3038_v2  ;;  %v2276_v5 = vsel %vm218_vm12, 1.0, %v3036_v25  ;;  %v2279_v6 = vsel %vm216_vm13, 1.0, %v3036_v25  ;;  %v2282_v7 = vadd.s32 72, %v1942_v3 }
  0x35   : > { %v2285_v26 = vadd.s32 80, %v1942_v3  ;;  %775 = vxpose.xlu1.c.b16.end [8/8] %v638_v39, 128  ;;  %v2288_v27 = vsel %vm222_vm14, 1.0, %v3036_v25  ;;  %v2291_v28 = vsel %vm220_vm15, 1.0, %v3036_v25  ;;  %vm226_vm0 = vcmp.eq.s32.totalorder %v2271_v4, %v1985_v17 }
  0x36   : > { %743 = vxpose.xlu0.c.b16.end [8/8] %v636_v42, 128  ;;  %v2296_v29 = vadd.s32 88, %v1942_v3  ;;  %vm230_vm1 = vcmp.eq.s32.totalorder %v2282_v7, %v1985_v17  ;;  %v2301_v30 = vsel %vm226_vm0, 1.0, %v3036_v25  ;;  %vm224_vm2 = vcmp.eq.s32.totalorder %v2271_v4, %v1988_v18 }
  0x37   : > { %vm228_vm3 = vcmp.eq.s32.totalorder %v2282_v7, %v1988_v18  ;;  %917 = vmatpush1.bf16.msra.mxu0 %v1896_v0  ;;  %1870 = vmatpush1.bf16.msra.mxu1 %v1896_v0  ;;  %v2311_v32 = vsel %vm230_vm1, 1.0, %v3036_v25  ;;  %v2314_v34 = vsel %vm224_vm2, 1.0, %v3036_v25  ;;  %vm234_vm4 = vcmp.eq.s32.totalorder %v2285_v26, %v1985_v17 }
  0x38   : > { %v2317_v36 = vsel %vm228_vm3, 1.0, %v3036_v25  ;;  %918 = vmatprep.subr.bf16.mxu0 %v3038_v2  ;;  %1855 = vmatprep.subr.bf16.mxu1 %v3038_v2  ;;  %v584_v38 = vpack.c.bf16 %v2257_v63, %v2254_v62  ;;  %vm238_vm5 = vcmp.eq.s32.totalorder %v2296_v29, %v1985_v17  ;;  %v2330_v42 = vsel %vm234_vm4, 1.0, %v3036_v25 }
  0x39   : > { %704 = vxpose.xlu1.c.b16.start [1/8] %v578_v45, 128  ;;  %v2336_v43 = vsel %vm238_vm5, 1.0, %v3036_v25  ;;  %vm232_vm6 = vcmp.eq.s32.totalorder %v2285_v26, %v1988_v18  ;;  %vm236_vm7 = vcmp.eq.s32.totalorder %v2296_v29, %v1988_v18  ;;  %v2343_v44 = vadd.s32 96, %v1942_v3 }
  0x3a   : > { %672 = vxpose.xlu0.c.b16.start [1/8] %v576_v56, 128  ;;  %v588_v53 = vpack.c.bf16 %v2291_v28, %v2279_v6  ;;  %v2352_v45 = vadd.s32 104, %v1942_v3  ;;  %v1898_v56 = vld [vmem:[%s3034_s1 + $0x60] sm:$0xff]   ;;  %v2364_v63 = vadd.s32 112, %v1942_v3  ;;  %v2372_v0 = vsel %vm232_vm6, 1.0, %v3036_v25 }
  0x3b   : > { %919 = vmatpush1.bf16.msra.mxu0 %v1897_v31  ;;  %1871 = vmatpush1.bf16.msra.mxu1 %v1897_v31  ;;  %vm242_vm8 = vcmp.eq.s32.totalorder %v2343_v44, %v1985_v17  ;;  %vm240_vm9 = vcmp.eq.s32.totalorder %v2343_v44, %v1988_v18  ;;  %v2378_v6 = vsel %vm236_vm7, 1.0, %v3036_v25  ;;  %v2397_v62 = vadd.s32 120, %v1942_v3 }
  0x3c   : > { %920 = vmatprep.subr.bf16.mxu0 %v3038_v2  ;;  %1856 = vmatprep.subr.bf16.mxu1 %v3038_v2  ;;  %vm246_vm10 = vcmp.eq.s32.totalorder %v2352_v45, %v1985_v17  ;;  %vm244_vm11 = vcmp.eq.s32.totalorder %v2352_v45, %v1988_v18  ;;  %v2391_v28 = vsel %vm242_vm8, 1.0, %v3036_v25  ;;  %v2394_v31 = vsel %vm240_vm9, 1.0, %v3036_v25 }
  0x3d   : > { %705 = vxpose.xlu1.c.b16.cont [2/8] %v582_v58, 128  ;;  %3042 = vst [vmem:[#allocation2_spill] sm:$0xff] %v2397_v62  ;;  %vm250_vm12 = vcmp.eq.s32.totalorder %v2364_v63, %v1985_v17  ;;  %v2402_v40 = vsel %vm246_vm10, 1.0, %v3036_v25  ;;  %v2405_v47 = vsel %vm244_vm11, 1.0, %v3036_v25  ;;  %vm248_vm13 = vcmp.eq.s32.totalorder %v2364_v63, %v1988_v18 }
  0x3e   : > { %673 = vxpose.xlu0.c.b16.cont [2/8] %v580_v61, 128  ;;  %v2408_v48 = vsel %vm250_vm12, 1.0, %v3036_v25  ;;  %vm254_vm14 = vcmp.eq.s32.totalorder %v2397_v62, %v1985_v17  ;;  %vm252_vm15 = vcmp.eq.s32.totalorder %v2397_v62, %v1988_v18  ;;  %v2420_v55 = vsel %vm248_vm13, 1.0, %v3036_v25 }
  0x3f   : > { %921 = vmatpush1.bf16.msra.mxu0 %v1898_v56  ;;  %1872 = vmatpush1.bf16.msra.mxu1 %v1898_v56  ;;  %v190_v58 = vsub.s32 3, %v1942_v3  ;;  %v2428_v56 = vsel %vm254_vm14, 1.0, %v3036_v25  ;;  %v2431_v17 = vsel %vm252_vm15, 1.0, %v3036_v25  ;;  %v182_v18 = vsub.s32 1, %v1942_v3 }
  0x40   : > { %922 = vmatprep.subr.bf16.mxu0 %v3038_v2  ;;  %1857 = vmatprep.subr.bf16.mxu1 %v3038_v2  ;;  %v602_v37 = vpack.c.bf16 %v2402_v40, %v2391_v28  ;;  %v600_v39 = vpack.c.bf16 %v2405_v47, %v2394_v31  ;;  %v3044_v59 = vmov 0.0   ;;  %v3051_v31 = vpack.c.bf16 %v2431_v17, %v2420_v55 }
  0x41   : > { %706 = vxpose.xlu1.c.b16.cont [3/8] %v586_v1, 128  ;;  %v2442_v61 = vrot.slane %v1970_v12, %v190_v58  ;;  %v2449_v62 = vrot.slane %v1970_v12, %v182_v18  ;;  %v3043_v12 = vmov 0  }
  0x42   : > { %674 = vxpose.xlu0.c.b16.cont [3/8] %v584_v38, 128 }
  0x43   : > { %923 = vmatpush1.bf16.msra.mxu0 %v1899_v54  ;;  %1873 = vmatpush1.bf16.msra.mxu1 %v1899_v54  ;;  %vm259_vm0 = vcmp.eq.s32.totalorder %v1959_v8, %v2442_v61  ;;  %vm263_vm1 = vcmp.eq.s32.totalorder %v1962_v9, %v2442_v61  ;;  %vm267_vm2 = vcmp.eq.s32.totalorder %v1965_v10, %v2442_v61 }
  0x44   : > { %vm271_vm3 = vcmp.eq.s32.totalorder %v1968_v11, %v2442_v61  ;;  %924 = vmatprep.subr.bf16.mxu0 %v3043_v12  ;;  %v2464_v1 = vsel %vm259_vm0, 1.0, %v3044_v59  ;;  %v2467_v38 = vsel %vm263_vm1, 1.0, %v3044_v59  ;;  %vm257_vm4 = vcmp.eq.s32.totalorder %v1959_v8, %v2449_v62  ;;  %1858 = vmatprep.subr.bf16.mxu1 %v3043_v12 }
  0x45   : > { %vm261_vm5 = vcmp.eq.s32.totalorder %v1962_v9, %v2449_v62  ;;  %v3045_v54 = vpack.c.bf16 %v2288_v27, %v2276_v5  ;;  %v611_v58 = vpack.c.bf16 %v2467_v38, %v2464_v1  ;;  %v2480_v18 = vsel %vm257_vm4, 1.0, %v3044_v59  ;;  %v1901_v5 = vld [vmem:[%s3034_s1 + $0x78] sm:$0xff]  }
  0x46   : > { %675 = vxpose.xlu0.c.b16.cont [4/8] %v588_v53, 128  ;;  %v2483_v2 = vsel %vm261_vm5, 1.0, %v3044_v59  ;;  %v2486_v8 = vsel %vm267_vm2, 1.0, %v3044_v59  ;;  %v2491_v25 = vsel %vm271_vm3, 1.0, %v3044_v59  ;;  %vm265_vm6 = vcmp.eq.s32.totalorder %v1965_v10, %v2449_v62 }
  0x47   : > { %707 = vxpose.xlu1.c.b16.cont [4/8] %v3045_v54, 128  ;;  %v609_v9 = vpack.c.bf16 %v2483_v2, %v2480_v18  ;;  %vm269_vm7 = vcmp.eq.s32.totalorder %v1968_v11, %v2449_v62  ;;  %925 = vmatpush1.bf16.msra.mxu0 %v1900_v57  ;;  %v2503_v53 = vsel %vm265_vm6, 1.0, %v3044_v59  ;;  %vm275_vm8 = vcmp.eq.s32.totalorder %v1973_v13, %v2442_v61 }
  0x48   : > { %1874 = vmatpush1.bf16.msra.mxu1 %v1900_v57  ;;  %v2506_v54 = vsel %vm269_vm7, 1.0, %v3044_v59  ;;  %926 = vmatprep.subr.bf16.mxu0 %v3043_v12  ;;  %vm279_vm9 = vcmp.eq.s32.totalorder %v1976_v14, %v2442_v61  ;;  %v2517_v11 = vsel %vm275_vm8, 1.0, %v3044_v59  ;;  %vm273_vm10 = vcmp.eq.s32.totalorder %v1973_v13, %v2449_v62 }
  0x49   : > { %1859 = vmatprep.subr.bf16.mxu1 %v3043_v12  ;;  %v3046_v57 = vpack.c.bf16 %v2311_v32, %v2301_v30  ;;  %v3047_v27 = vpack.c.bf16 %v2317_v36, %v2314_v34  ;;  %v2528_v12 = vsel %vm279_vm9, 1.0, %v3044_v59  ;;  %vm277_vm11 = vcmp.eq.s32.totalorder %v1976_v14, %v2449_v62 }
  0x4a   : > { %v2533_v10 = vsel %vm273_vm10, 1.0, %v3044_v59  ;;  %vm283_vm12 = vcmp.eq.s32.totalorder %v1979_v15, %v2442_v61  ;;  %v619_v13 = vpack.c.bf16 %v2528_v12, %v2517_v11  ;;  %v2540_v30 = vsel %vm277_vm11, 1.0, %v3044_v59 }
  0x4b   : > { %708 = vxpose.xlu1.c.b16.cont [5/8] %v3046_v57, 128  ;;  %676 = vxpose.xlu0.c.b16.cont [5/8] %v3047_v27, 128  ;;  %vm287_vm13 = vcmp.eq.s32.totalorder %v1982_v16, %v2442_v61  ;;  %v2545_v32 = vsel %vm283_vm12, 1.0, %v3044_v59  ;;  %vm281_vm14 = vcmp.eq.s32.totalorder %v1979_v15, %v2449_v62  ;;  %vm285_vm15 = vcmp.eq.s32.totalorder %v1982_v16, %v2449_v62 }
  0x4c   : > { %927 = vmatpush1.bf16.msra.mxu0 %v1901_v5  ;;  %1875 = vmatpush1.bf16.msra.mxu1 %v1901_v5  ;;  %v2550_v34 = vsel %vm287_vm13, 1.0, %v3044_v59  ;;  %v2559_v27 = vsel %vm281_vm14, 1.0, %v3044_v59  ;;  %v2562_v5 = vsel %vm285_vm15, 1.0, %v3044_v59  ;;  %vm291_vm0 = vcmp.eq.s32.totalorder %v1991_v19, %v2442_v61 }
  0x4d   : > { %v3048_v57 = vpack.c.bf16 %v2336_v43, %v2330_v42  ;;  %v3049_v15 = vpack.c.bf16 %v2378_v6, %v2372_v0  ;;  %v621_v16 = vpack.c.bf16 %v2562_v5, %v2559_v27  ;;  %vm295_vm1 = vcmp.eq.s32.totalorder %v1994_v20, %v2442_v61 }
  0x4e   : > { %v2577_v36 = vsel %vm291_vm0, 1.0, %v3044_v59  ;;  %vm289_vm2 = vcmp.eq.s32.totalorder %v1991_v19, %v2449_v62  ;;  %v2582_v14 = vsel %vm295_vm1, 1.0, %v3044_v59  ;;  %vm293_vm3 = vcmp.eq.s32.totalorder %v1994_v20, %v2449_v62 }
  0x4f   : > { %709 = vxpose.xlu1.c.b16.cont [6/8] %v3048_v57, 128  ;;  %677 = vxpose.xlu0.c.b16.cont [6/8] %v3049_v15, 128  ;;  %v2587_v42 = vsel %vm289_vm2, 1.0, %v3044_v59  ;;  %vm299_vm4 = vcmp.eq.s32.totalorder %v1999_v21, %v2442_v61  ;;  %v627_v43 = vpack.c.bf16 %v2582_v14, %v2577_v36  ;;  %v2594_v0 = vsel %vm293_vm3, 1.0, %v3044_v59 }
  0x50   : > { %vm303_vm5 = vcmp.eq.s32.totalorder %v2002_v22, %v2442_v61  ;;  %v2599_v19 = vsel %vm299_vm4, 1.0, %v3044_v59  ;;  %vm297_vm6 = vcmp.eq.s32.totalorder %v1999_v21, %v2449_v62  ;;  %vm301_vm7 = vcmp.eq.s32.totalorder %v2002_v22, %v2449_v62 }
  0x51   : > { %v2604_v6 = vsel %vm303_vm5, 1.0, %v3044_v59  ;;  %v2619_v15 = vsel %vm297_vm6, 1.0, %v3044_v59  ;;  %v2622_v20 = vsel %vm301_vm7, 1.0, %v3044_v59  ;;  %vm307_vm8 = vcmp.eq.s32.totalorder %v2005_v23, %v2442_v61 }
  0x52   : > { %v631_v57 = vpack.c.bf16 %v2604_v6, %v2599_v19  ;;  %v629_v21 = vpack.c.bf16 %v2622_v20, %v2619_v15  ;;  %vm311_vm9 = vcmp.eq.s32.totalorder %v2008_v24, %v2442_v61  ;;  %v2631_v22 = vsel %vm307_vm8, 1.0, %v3044_v59 }
  0x53   : > { %710 = vxpose.xlu1.c.b16.cont [7/8] %v602_v37, 128  ;;  %678 = vxpose.xlu0.c.b16.cont [7/8] %v600_v39, 128  ;;  %vm305_vm10 = vcmp.eq.s32.totalorder %v2005_v23, %v2449_v62  ;;  %v2636_v39 = vsel %vm311_vm9, 1.0, %v3044_v59  ;;  %vm309_vm11 = vcmp.eq.s32.totalorder %v2008_v24, %v2449_v62  ;;  %vm315_vm12 = vcmp.eq.s32.totalorder %v2078_v51, %v2442_v61 }
  0x54   : > { %v2641_v37 = vsel %vm305_vm10, 1.0, %v3044_v59  ;;  %v2648_v28 = vsel %vm309_vm11, 1.0, %v3044_v59  ;;  %vm319_vm13 = vcmp.eq.s32.totalorder %v2081_v52, %v2442_v61  ;;  %v2653_v23 = vsel %vm315_vm12, 1.0, %v3044_v59 }
  0x55   : > { %v3050_v24 = vpack.c.bf16 %v2428_v56, %v2408_v48  ;;  %v633_v47 = vpack.c.bf16 %v2648_v28, %v2641_v37  ;;  %v2664_v40 = vsel %vm319_vm13, 1.0, %v3044_v59  ;;  %vm313_vm14 = vcmp.eq.s32.totalorder %v2078_v51, %v2449_v62 }
  0x56   : > { %vm317_vm15 = vcmp.eq.s32.totalorder %v2081_v52, %v2449_v62  ;;  %v639_v48 = vpack.c.bf16 %v2664_v40, %v2653_v23  ;;  %v2673_v56 = vsel %vm313_vm14, 1.0, %v3044_v59  ;;  %vm195_vm0 = vcmp.eq.s32.totalorder %v1942_v3, %v2442_v61 }
  0x57   : > { %711 = vxpose.xlu1.c.b16.end [8/8] %v3050_v24, 128  ;;  %679 = vxpose.xlu0.c.b16.end [8/8] %v3051_v31, 128  ;;  %v2676_v55 = vsel %vm317_vm15, 1.0, %v3044_v59  ;;  %vm199_vm1 = vcmp.eq.s32.totalorder %v2149_v33, %v2442_v61  ;;  %v2685_v51 = vsel %vm195_vm0, 1.0, %v3044_v59  ;;  %vm193_vm2 = vcmp.eq.s32.totalorder %v1942_v3, %v2449_v62 }
  0x58   : > { %v637_v17 = vpack.c.bf16 %v2676_v55, %v2673_v56  ;;  %v2690_v52 = vsel %vm199_vm1, 1.0, %v3044_v59  ;;  %vm197_vm3 = vcmp.eq.s32.totalorder %v2149_v33, %v2449_v62  ;;  %v2695_v24 = vsel %vm193_vm2, 1.0, %v3044_v59 }
  0x59   : > { %vm203_vm4 = vcmp.eq.s32.totalorder %v2159_v35, %v2442_v61  ;;  %v579_v3 = vpack.c.bf16 %v2690_v52, %v2685_v51  ;;  %v2708_v31 = vsel %vm197_vm3, 1.0, %v3044_v59  ;;  %vm207_vm5 = vcmp.eq.s32.totalorder %v2177_v41, %v2442_v61 }
  0x5a   : > { %v2713_v33 = vsel %vm203_vm4, 1.0, %v3044_v59  ;;  %v2718_v38 = vsel %vm207_vm5, 1.0, %v3044_v59  ;;  %vm201_vm6 = vcmp.eq.s32.totalorder %v2159_v35, %v2449_v62  ;;  %vm205_vm7 = vcmp.eq.s32.totalorder %v2177_v41, %v2449_v62 }
  0x5b   : > { %784 = vxpose.xlu1.c.b16.start [1/8] %v611_v58, 128  ;;  %752 = vxpose.xlu0.c.b16.start [1/8] %v609_v9, 128  ;;  %v2727_v58 = vsel %vm201_vm6, 1.0, %v3044_v59  ;;  %v2730_v18 = vsel %vm205_vm7, 1.0, %v3044_v59  ;;  %vm211_vm8 = vcmp.eq.s32.totalorder %v2203_v46, %v2442_v61  ;;  %vm215_vm9 = vcmp.eq.s32.totalorder %v2212_v49, %v2442_v61 }
  0x5c   : > { %v2739_v35 = vsel %vm211_vm8, 1.0, %v3044_v59  ;;  %vm209_vm10 = vcmp.eq.s32.totalorder %v2203_v46, %v2449_v62  ;;  %v3052_v41 = vpack.c.bf16 %v2491_v25, %v2486_v8  ;;  %v3053_v2 = vpack.c.bf16 %v2506_v54, %v2503_v53 }
  0x5d   : > { %v2750_v1 = vsel %vm215_vm9, 1.0, %v3044_v59  ;;  %vm213_vm11 = vcmp.eq.s32.totalorder %v2212_v49, %v2449_v62  ;;  %v2755_v9 = vsel %vm209_vm10, 1.0, %v3044_v59  ;;  %vm219_vm12 = vcmp.eq.s32.totalorder %v2215_v50, %v2442_v61 }
  0x5e   : > { %v587_v25 = vpack.c.bf16 %v2750_v1, %v2739_v35  ;;  %v2762_v46 = vsel %vm213_vm11, 1.0, %v3044_v59  ;;  %vm223_vm13 = vcmp.eq.s32.totalorder %v2247_v60, %v2442_v61  ;;  %v2767_v8 = vsel %vm219_vm12, 1.0, %v3044_v59 }
  0x5f   : > { %785 = vxpose.xlu1.c.b16.cont [2/8] %v3052_v41, 128  ;;  %753 = vxpose.xlu0.c.b16.cont [2/8] %v3053_v2, 128  ;;  %v2772_v53 = vsel %vm223_vm13, 1.0, %v3044_v59  ;;  %vm217_vm14 = vcmp.eq.s32.totalorder %v2215_v50, %v2449_v62  ;;  %vm221_vm15 = vcmp.eq.s32.totalorder %v2247_v60, %v2449_v62  ;;  %vm227_vm0 = vcmp.eq.s32.totalorder %v2271_v4, %v2442_v61 }
  0x60   : > { %v2781_v2 = vsel %vm217_vm14, 1.0, %v3044_v59  ;;  %v2784_v41 = vsel %vm221_vm15, 1.0, %v3044_v59  ;;  %v3054_v50 = vpack.c.bf16 %v2540_v30, %v2533_v10  ;;  %vm231_vm1 = vcmp.eq.s32.totalorder %v2282_v7, %v2442_v61 }
  0x61   : > { %v589_v60 = vpack.c.bf16 %v2784_v41, %v2781_v2  ;;  %v2799_v54 = vsel %vm227_vm0, 1.0, %v3044_v59  ;;  %vm225_vm2 = vcmp.eq.s32.totalorder %v2271_v4, %v2449_v62  ;;  %v1608_v49 = vsel %vm231_vm1, 1.0, %v3044_v59 }
  0x62   : > { %vm229_vm3 = vcmp.eq.s32.totalorder %v2282_v7, %v2449_v62  ;;  %v1602_v10 = vsel %vm225_vm2, 1.0, %v3044_v59  ;;  %vm235_vm4 = vcmp.eq.s32.totalorder %v2285_v26, %v2442_v61  ;;  %v595_v11 = vpack.c.bf16 %v1608_v49, %v2799_v54 }
  0x63   : > { %786 = vxpose.xlu1.c.b16.cont [3/8] %v619_v13, 128  ;;  %754 = vxpose.xlu0.c.b16.cont [3/8] %v3054_v50, 128  ;;  %v1606_v12 = vsel %vm229_vm3, 1.0, %v3044_v59  ;;  %vm239_vm5 = vcmp.eq.s32.totalorder %v2296_v29, %v2442_v61  ;;  %v1612_v13 = vsel %vm235_vm4, 1.0, %v3044_v59  ;;  %vm233_vm6 = vcmp.eq.s32.totalorder %v2285_v26, %v2449_v62 }
  0x64   : > { %v593_v4 = vpack.c.bf16 %v1606_v12, %v1602_v10  ;;  %v1616_v30 = vsel %vm239_vm5, 1.0, %v3044_v59  ;;  %vm237_vm7 = vcmp.eq.s32.totalorder %v2296_v29, %v2449_v62  ;;  %v3055_v7 = vpack.c.bf16 %v2550_v34, %v2545_v32 }
  0x65   : > { %v599_v49 = vpack.c.bf16 %v1616_v30, %v1612_v13  ;;  %v1610_v54 = vsel %vm233_vm6, 1.0, %v3044_v59  ;;  %v1614_v2 = vsel %vm237_vm7, 1.0, %v3044_v59  ;;  %vm243_vm8 = vcmp.eq.s32.totalorder %v2343_v44, %v2442_v61 }
  0x66   : > { %v597_v26 = vpack.c.bf16 %v1614_v2, %v1610_v54  ;;  %vm247_vm9 = vcmp.eq.s32.totalorder %v2352_v45, %v2442_v61  ;;  %v1620_v29 = vsel %vm243_vm8, 1.0, %v3044_v59  ;;  %vm241_vm10 = vcmp.eq.s32.totalorder %v2343_v44, %v2449_v62 }
  0x67   : > { %787 = vxpose.xlu1.c.b16.cont [4/8] %v3055_v7, 128  ;;  %755 = vxpose.xlu0.c.b16.cont [4/8] %v621_v16, 128  ;;  %v1624_v32 = vsel %vm247_vm9, 1.0, %v3044_v59  ;;  %vm245_vm11 = vcmp.eq.s32.totalorder %v2352_v45, %v2449_v62  ;;  %v1618_v34 = vsel %vm241_vm10, 1.0, %v3044_v59  ;;  %vm251_vm12 = vcmp.eq.s32.totalorder %v2364_v63, %v2442_v61  ;;  %v3056_v16 = vld [vmem:[#allocation2_spill] sm:$0xff] }
  0x68   : > { %v603_v27 = vpack.c.bf16 %v1624_v32, %v1620_v29  ;;  %v1622_v5 = vsel %vm245_vm11, 1.0, %v3044_v59  ;;  %vm255_vm13 = vcmp.eq.s32.totalorder %v3056_v16, %v2442_v61  ;;  %v1628_v41 = vsel %vm251_vm12, 1.0, %v3044_v59 }
  0x69   : > { %v3057_v44 = vpack.c.bf16 %v2594_v0, %v2587_v42  ;;  %v601_v45 = vpack.c.bf16 %v1622_v5, %v1618_v34  ;;  %v1632_v50 = vsel %vm255_vm13, 1.0, %v3044_v59  ;;  %vm249_vm14 = vcmp.eq.s32.totalorder %v2364_v63, %v2449_v62 }
  0x6a   : > { %vm253_vm15 = vcmp.eq.s32.totalorder %v3056_v16, %v2449_v62  ;;  %v607_v61 = vpack.c.bf16 %v1632_v50, %v1628_v41  ;;  %v1626_v10 = vsel %vm249_vm14, 1.0, %v3044_v59  ;;  %v3058_v63 = vpack.c.bf16 %v2636_v39, %v2631_v22 }
  0x6b   : > { %788 = vxpose.xlu1.c.b16.cont [5/8] %v627_v43, 128  ;;  %756 = vxpose.xlu0.c.b16.cont [5/8] %v3057_v44, 128  ;;  %v1630_v12 = vsel %vm253_vm15, 1.0, %v3044_v59  ;;  %v3059_v62 = vpack.c.bf16 %v2708_v31, %v2695_v24  ;;  %v3060_v59 = vpack.c.bf16 %v2718_v38, %v2713_v33  ;;  %v3061_v36 = vpack.c.bf16 %v2730_v18, %v2727_v58 }
  0x6c   : > { %v605_v14 = vpack.c.bf16 %v1630_v12, %v1626_v10  ;;  %v3062_v0 = vpack.c.bf16 %v2762_v46, %v2755_v9  ;;  %v3063_v6 = vpack.c.bf16 %v2772_v53, %v2767_v8  ;;  %vm1441_vm0 = vcmask 257024  }
  0x6f   : > { %789 = vxpose.xlu1.c.b16.cont [6/8] %v631_v57, 128  ;;  %757 = vxpose.xlu0.c.b16.cont [6/8] %v629_v21, 128 }
  0x73   : > { %790 = vxpose.xlu1.c.b16.cont [7/8] %v3058_v63, 128  ;;  %758 = vxpose.xlu0.c.b16.cont [7/8] %v633_v47, 128 }
  0x77   : > { %791 = vxpose.xlu1.c.b16.end [8/8] %v639_v48, 128  ;;  %759 = vxpose.xlu0.c.b16.end [8/8] %v637_v17, 128 }
  0x7b   : > { %720 = vxpose.xlu1.c.b16.start [1/8] %v579_v3, 128  ;;  %688 = vxpose.xlu0.c.b16.start [1/8] %v3059_v62, 128 }
  0x7f   : > { %721 = vxpose.xlu1.c.b16.cont [2/8] %v3060_v59, 128  ;;  %689 = vxpose.xlu0.c.b16.cont [2/8] %v3061_v36, 128  ;;  %v776_v42 = vpop.trf.xlu1 }
  0x80   : > { %v744_v43 = vpop.trf.xlu0  ;;  %1056 = vmatprep.mubr.bf16.mxu1 %v776_v42 }
  0x81   : > { %928 = vmatprep.mubr.bf16.mxu0 %v744_v43 }
  0x83   : > { %722 = vxpose.xlu1.c.b16.cont [3/8] %v587_v25, 128  ;;  %690 = vxpose.xlu0.c.b16.cont [3/8] %v3062_v0, 128  ;;  %v777_v19 = vpop.trf.xlu1 }
  0x84   : > { %v745_v20 = vpop.trf.xlu0 }
  0x87   : > { %723 = vxpose.xlu1.c.b16.cont [4/8] %v3063_v6, 128  ;;  %691 = vxpose.xlu0.c.b16.cont [4/8] %v589_v60, 128  ;;  %v778_v57 = vpop.trf.xlu1 }
  0x88   : > { %v746_v15 = vpop.trf.xlu0 }
  0x8b   : > { %724 = vxpose.xlu1.c.b16.cont [5/8] %v595_v11, 128  ;;  %692 = vxpose.xlu0.c.b16.cont [5/8] %v593_v4, 128  ;;  %v779_v21 = vpop.trf.xlu1 }
  0x8c   : > { %v747_v22 = vpop.trf.xlu0 }
  0x8f   : > { %725 = vxpose.xlu1.c.b16.cont [6/8] %v599_v49, 128  ;;  %693 = vxpose.xlu0.c.b16.cont [6/8] %v597_v26, 128  ;;  %v780_v39 = vpop.trf.xlu1 }
  0x90   : > { %v748_v37 = vpop.trf.xlu0 }
  0x93   : > { %726 = vxpose.xlu1.c.b16.cont [7/8] %v603_v27, 128  ;;  %694 = vxpose.xlu0.c.b16.cont [7/8] %v601_v45, 128  ;;  %v781_v40 = vpop.trf.xlu1 }
  0x94   : > { %v749_v28 = vpop.trf.xlu0 }
  0x97   : > { %727 = vxpose.xlu1.c.b16.end [8/8] %v607_v61, 128  ;;  %695 = vxpose.xlu0.c.b16.end [8/8] %v605_v14, 128  ;;  %v782_v23 = vpop.trf.xlu1 }
  0x98   : > { %v750_v47 = vpop.trf.xlu0 }
  0x9b   : > { %v783_v48 = vpop.trf.xlu1 }
  0x9c   : > { %v751_v56 = vpop.trf.xlu0 }
  0xa1   : > { %v712_v55 = vpop.trf.xlu1  ;;  %v680_v17 = vpop.trf.xlu0 }
  0xa2   : > { %929 = vmatmul.mubr.bf16.vlgmr.msra.gmra.mrb[0].mxu0 %v680_v17  ;;  %1057 = vmatmul.mubr.bf16.vlgmr.msra.gmra.mrb[0].mxu1 %v712_v55 }
  0xa3   : > { %936 = vmatprep.mubr.bf16.mxu0 %v745_v20  ;;  %1064 = vmatprep.mubr.bf16.mxu1 %v777_v19 }
  0xa5   : > { %v713_v51 = vpop.trf.xlu1  ;;  %v681_v52 = vpop.trf.xlu0 }
  0xa9   : > { %v714_v24 = vpop.trf.xlu1  ;;  %v682_v3 = vpop.trf.xlu0 }
  0xaa   : > { %937 = vmatmul.mubr.bf16.gmra.mrb[4].mxu0 %v681_v52  ;;  %1065 = vmatmul.mubr.bf16.gmra.mrb[4].mxu1 %v713_v51 }
  0xab   : > { %944 = vmatprep.mubr.bf16.mxu0 %v746_v15  ;;  %1072 = vmatprep.mubr.bf16.mxu1 %v778_v57 }
  0xad   : > { %v715_v31 = vpop.trf.xlu1  ;;  %v683_v33 = vpop.trf.xlu0 }
  0xb1   : > { %v716_v1 = vpop.trf.xlu1  ;;  %v684_v38 = vpop.trf.xlu0 }
  0xb2   : > { %945 = vmatmul.mubr.bf16.gmra.mrb[8].mxu0 %v682_v3  ;;  %1073 = vmatmul.mubr.bf16.gmra.mrb[8].mxu1 %v714_v24 }
  0xb3   : > { %952 = vmatprep.mubr.bf16.mxu0 %v747_v22  ;;  %1080 = vmatprep.mubr.bf16.mxu1 %v779_v21 }
  0xb5   : > { %v717_v58 = vpop.trf.xlu1  ;;  %v685_v18 = vpop.trf.xlu0 }
  0xb9   : > { %v718_v9 = vpop.trf.xlu1  ;;  %v686_v35 = vpop.trf.xlu0 }
  0xba   : > { %953 = vmatmul.mubr.bf16.gmra.mrb[12].mxu0 %v683_v33  ;;  %1081 = vmatmul.mubr.bf16.gmra.mrb[12].mxu1 %v715_v31 }
  0xbb   : > { %960 = vmatprep.mubr.bf16.mxu0 %v748_v37  ;;  %1088 = vmatprep.mubr.bf16.mxu1 %v780_v39 }
  0xbd   : > { %v719_v25 = vpop.trf.xlu1  ;;  %v687_v46 = vpop.trf.xlu0 }
  0xc1   : > { %v792_v8 = vpop.trf.xlu1  ;;  %v760_v53 = vpop.trf.xlu0 }
  0xc2   : > { %961 = vmatmul.mubr.bf16.gmra.mrb[16].mxu0 %v684_v38  ;;  %1089 = vmatmul.mubr.bf16.gmra.mrb[16].mxu1 %v716_v1 }
  0xc3   : > { %968 = vmatprep.mubr.bf16.mxu0 %v749_v28  ;;  %1096 = vmatprep.mubr.bf16.mxu1 %v781_v40 }
  0xc5   : > { %v793_v60 = vpop.trf.xlu1  ;;  %v761_v11 = vpop.trf.xlu0 }
  0xc9   : > { %v794_v13 = vpop.trf.xlu1  ;;  %v762_v4 = vpop.trf.xlu0 }
  0xca   : > { %969 = vmatmul.mubr.bf16.gmra.mrb[20].mxu0 %v685_v18  ;;  %1097 = vmatmul.mubr.bf16.gmra.mrb[20].mxu1 %v717_v58 }
  0xcb   : > { %976 = vmatprep.mubr.bf16.mxu0 %v750_v47  ;;  %1104 = vmatprep.mubr.bf16.mxu1 %v782_v23 }
  0xcd   : > { %v795_v30 = vpop.trf.xlu1  ;;  %v763_v7 = vpop.trf.xlu0 }
  0xd1   : > { %v796_v49 = vpop.trf.xlu1  ;;  %v764_v54 = vpop.trf.xlu0 }
  0xd2   : > { %977 = vmatmul.mubr.bf16.gmra.mrb[24].mxu0 %v686_v35  ;;  %1105 = vmatmul.mubr.bf16.gmra.mrb[24].mxu1 %v718_v9 }
  0xd3   : > { %984 = vmatprep.mubr.bf16.mxu0 %v751_v56  ;;  %1112 = vmatprep.mubr.bf16.mxu1 %v783_v48 }
  0xd5   : > { %v797_v2 = vpop.trf.xlu1  ;;  %v765_v26 = vpop.trf.xlu0 }
  0xd9   : > { %v798_v29 = vpop.trf.xlu1  ;;  %v766_v32 = vpop.trf.xlu0 }
  0xda   : > { %985 = vmatmul.mubr.bf16.gmra.mrb[28].mxu0 %v687_v46  ;;  %1113 = vmatmul.mubr.bf16.gmra.mrb[28].mxu1 %v719_v25 }
  0xdb   : > { %992 = vmatprep.mubr.bf16.mxu0 %v760_v53  ;;  %1120 = vmatprep.mubr.bf16.mxu1 %v792_v8 }
  0xdd   : > { %v799_v34 = vpop.trf.xlu1  ;;  %v767_v27 = vpop.trf.xlu0 }
  0xe1   : > { %v728_v5 = vpop.trf.xlu1  ;;  %v696_v16 = vpop.trf.xlu0 }
  0xe2   : > { %993 = vmatmul.mubr.bf16.gmra.mrb[32].mxu0 %v696_v16  ;;  %1121 = vmatmul.mubr.bf16.gmra.mrb[32].mxu1 %v728_v5 }
  0xe3   : > { %1000 = vmatprep.mubr.bf16.mxu0 %v761_v11  ;;  %1128 = vmatprep.mubr.bf16.mxu1 %v793_v60 }
  0xe5   : > { %v729_v41 = vpop.trf.xlu1  ;;  %v697_v44 = vpop.trf.xlu0 }
  0xe9   : > { %v730_v45 = vpop.trf.xlu1  ;;  %v698_v50 = vpop.trf.xlu0 }
  0xea   : > { %1001 = vmatmul.mubr.bf16.gmra.mrb[36].mxu0 %v697_v44  ;;  %1129 = vmatmul.mubr.bf16.gmra.mrb[36].mxu1 %v729_v41 }
  0xeb   : > { %1008 = vmatprep.mubr.bf16.mxu0 %v762_v4  ;;  %1136 = vmatprep.mubr.bf16.mxu1 %v794_v13 }
  0xed   : > { %v731_v61 = vpop.trf.xlu1  ;;  %v699_v10 = vpop.trf.xlu0 }
  0xf1   : > { %v732_v12 = vpop.trf.xlu1  ;;  %v700_v14 = vpop.trf.xlu0 }
  0xf2   : > { %1009 = vmatmul.mubr.bf16.gmra.mrb[40].mxu0 %v698_v50  ;;  %1137 = vmatmul.mubr.bf16.gmra.mrb[40].mxu1 %v730_v45 }
  0xf3   : > { %1016 = vmatprep.mubr.bf16.mxu0 %v763_v7  ;;  %1144 = vmatprep.mubr.bf16.mxu1 %v795_v30 }
  0xf5   : > { %v733_v63 = vpop.trf.xlu1  ;;  %v701_v62 = vpop.trf.xlu0 }
  0xf9   : > { %v734_v59 = vpop.trf.xlu1  ;;  %v702_v36 = vpop.trf.xlu0 }
  0xfa   : > { %1017 = vmatmul.mubr.bf16.gmra.mrb[44].mxu0 %v699_v10  ;;  %1145 = vmatmul.mubr.bf16.gmra.mrb[44].mxu1 %v731_v61 }
  0xfb   : > { %1024 = vmatprep.mubr.bf16.mxu0 %v764_v54  ;;  %1152 = vmatprep.mubr.bf16.mxu1 %v796_v49 }
  0xfd   : > { %v735_v42 = vpop.trf.xlu1  ;;  %v703_v43 = vpop.trf.xlu0 }
 0x102   : > { %1025 = vmatmul.mubr.bf16.gmra.mrb[48].mxu0 %v700_v14  ;;  %1153 = vmatmul.mubr.bf16.gmra.mrb[48].mxu1 %v732_v12 }
 0x103   : > { %1032 = vmatprep.mubr.bf16.mxu0 %v765_v26  ;;  %1160 = vmatprep.mubr.bf16.mxu1 %v797_v2 }
 0x10a   : > { %1033 = vmatmul.mubr.bf16.gmra.mrb[52].mxu0 %v701_v62  ;;  %1161 = vmatmul.mubr.bf16.gmra.mrb[52].mxu1 %v733_v63 }
 0x10b   : > { %1040 = vmatprep.mubr.bf16.mxu0 %v766_v32  ;;  %1168 = vmatprep.mubr.bf16.mxu1 %v798_v29 }
 0x112   : > { %1041 = vmatmul.mubr.bf16.gmra.mrb[56].mxu0 %v702_v36  ;;  %1169 = vmatmul.mubr.bf16.gmra.mrb[56].mxu1 %v734_v59 }
 0x113   : > { %1048 = vmatprep.mubr.bf16.mxu0 %v767_v27  ;;  %1176 = vmatprep.mubr.bf16.mxu1 %v799_v34 }
 0x11a   : > { %1049 = vmatmul.mubr.bf16.gmra.mrb[60].mxu0 %v703_v43  ;;  %1177 = vmatmul.mubr.bf16.gmra.mrb[60].mxu1 %v735_v42 }
 0x175   : > { %v930_v0 = vpop.f32.mrb[0].mxu0  ;;  %v1058_v19 = vpop.f32.mrb[0].mxu1 }
 0x176   : > { %v1780_v20 = vpack.c.bf16 %v930_v0, %v930_v0  ;;  %v1812_v6 = vpack.c.bf16 %v1058_v19, %v1058_v19  ;;  %v932_v57 = vpop.f32.mrb[1].mxu0  ;;  %v1060_v15 = vpop.f32.mrb[1].mxu1 }
 0x177   : > { %v933_v21 = vpop.f32.mrb[2].mxu0  ;;  %v1061_v22 = vpop.f32.mrb[2].mxu1 }
 0x178   : > { %1442 = vst.msk [vmem:[%s2900_s24] sm:$0xf] %vm1441_vm0, %v1780_v20  ;;  %1474 = vst.msk [vmem:[%s2900_s24 + $0x80] sm:$0xf] %vm1441_vm0, %v1812_v6  ;;  %v1781_v39 = vpack.c.bf16 %v933_v21, %v933_v21  ;;  %v1813_v37 = vpack.c.bf16 %v1061_v22, %v1061_v22  ;;  %v935_v40 = vpop.f32.mrb[3].mxu0  ;;  %v1063_v28 = vpop.f32.mrb[3].mxu1 }
 0x17a   : > { %1443 = vst.msk [vmem:[%s2900_s24 + $0x4] sm:$0xf] %vm1441_vm0, %v1781_v39  ;;  %1475 = vst.msk [vmem:[%s2900_s24 + $0x84] sm:$0xf] %vm1441_vm0, %v1813_v37 }
 0x17d   : > { %v938_v23 = vpop.f32.mrb[4].mxu0  ;;  %v1066_v47 = vpop.f32.mrb[4].mxu1 }
 0x17e   : > { %v1782_v48 = vpack.c.bf16 %v938_v23, %v938_v23  ;;  %v1814_v56 = vpack.c.bf16 %v1066_v47, %v1066_v47  ;;  %v940_v55 = vpop.f32.mrb[5].mxu0  ;;  %v1068_v17 = vpop.f32.mrb[5].mxu1 }
 0x17f   : > { %v941_v51 = vpop.f32.mrb[6].mxu0  ;;  %v1069_v52 = vpop.f32.mrb[6].mxu1 }
 0x180   : > { %1444 = vst.msk [vmem:[%s2900_s24 + $0x8] sm:$0xf] %vm1441_vm0, %v1782_v48  ;;  %1476 = vst.msk [vmem:[%s2900_s24 + $0x88] sm:$0xf] %vm1441_vm0, %v1814_v56  ;;  %v1783_v24 = vpack.c.bf16 %v941_v51, %v941_v51  ;;  %v1815_v3 = vpack.c.bf16 %v1069_v52, %v1069_v52  ;;  %v943_v31 = vpop.f32.mrb[7].mxu0  ;;  %v1071_v33 = vpop.f32.mrb[7].mxu1 }
 0x182   : > { %1445 = vst.msk [vmem:[%s2900_s24 + $0xc] sm:$0xf] %vm1441_vm0, %v1783_v24  ;;  %1477 = vst.msk [vmem:[%s2900_s24 + $0x8c] sm:$0xf] %vm1441_vm0, %v1815_v3 }
 0x185   : > { %v946_v1 = vpop.f32.mrb[8].mxu0  ;;  %v1074_v38 = vpop.f32.mrb[8].mxu1 }
 0x186   : > { %v1784_v58 = vpack.c.bf16 %v946_v1, %v946_v1  ;;  %v1816_v18 = vpack.c.bf16 %v1074_v38, %v1074_v38  ;;  %v948_v9 = vpop.f32.mrb[9].mxu0  ;;  %v1076_v35 = vpop.f32.mrb[9].mxu1 }
 0x187   : > { %v949_v25 = vpop.f32.mrb[10].mxu0  ;;  %v1077_v46 = vpop.f32.mrb[10].mxu1 }
 0x188   : > { %1446 = vst.msk [vmem:[%s2900_s24 + $0x10] sm:$0xf] %vm1441_vm0, %v1784_v58  ;;  %1478 = vst.msk [vmem:[%s2900_s24 + $0x90] sm:$0xf] %vm1441_vm0, %v1816_v18  ;;  %v1785_v8 = vpack.c.bf16 %v949_v25, %v949_v25  ;;  %v1817_v53 = vpack.c.bf16 %v1077_v46, %v1077_v46  ;;  %v951_v60 = vpop.f32.mrb[11].mxu0  ;;  %v1079_v11 = vpop.f32.mrb[11].mxu1 }
 0x18a   : > { %1447 = vst.msk [vmem:[%s2900_s24 + $0x14] sm:$0xf] %vm1441_vm0, %v1785_v8  ;;  %1479 = vst.msk [vmem:[%s2900_s24 + $0x94] sm:$0xf] %vm1441_vm0, %v1817_v53 }
 0x18d   : > { %v954_v13 = vpop.f32.mrb[12].mxu0  ;;  %v1082_v4 = vpop.f32.mrb[12].mxu1 }
 0x18e   : > { %v1786_v30 = vpack.c.bf16 %v954_v13, %v954_v13  ;;  %v1818_v7 = vpack.c.bf16 %v1082_v4, %v1082_v4  ;;  %v956_v49 = vpop.f32.mrb[13].mxu0  ;;  %v1084_v54 = vpop.f32.mrb[13].mxu1 }
 0x18f   : > { %v957_v2 = vpop.f32.mrb[14].mxu0  ;;  %v1085_v26 = vpop.f32.mrb[14].mxu1 }
 0x190   : > { %1448 = vst.msk [vmem:[%s2900_s24 + $0x18] sm:$0xf] %vm1441_vm0, %v1786_v30  ;;  %1480 = vst.msk [vmem:[%s2900_s24 + $0x98] sm:$0xf] %vm1441_vm0, %v1818_v7  ;;  %v1787_v29 = vpack.c.bf16 %v957_v2, %v957_v2  ;;  %v1819_v32 = vpack.c.bf16 %v1085_v26, %v1085_v26  ;;  %v959_v34 = vpop.f32.mrb[15].mxu0  ;;  %v1087_v27 = vpop.f32.mrb[15].mxu1 }
 0x192   : > { %1449 = vst.msk [vmem:[%s2900_s24 + $0x1c] sm:$0xf] %vm1441_vm0, %v1787_v29  ;;  %1481 = vst.msk [vmem:[%s2900_s24 + $0x9c] sm:$0xf] %vm1441_vm0, %v1819_v32 }
 0x195   : > { %v962_v5 = vpop.f32.mrb[16].mxu0  ;;  %v1090_v16 = vpop.f32.mrb[16].mxu1 }
 0x196   : > { %v1788_v41 = vpack.c.bf16 %v962_v5, %v962_v5  ;;  %v1820_v44 = vpack.c.bf16 %v1090_v16, %v1090_v16  ;;  %v964_v45 = vpop.f32.mrb[17].mxu0  ;;  %v1092_v50 = vpop.f32.mrb[17].mxu1 }
 0x197   : > { %v965_v61 = vpop.f32.mrb[18].mxu0  ;;  %v1093_v10 = vpop.f32.mrb[18].mxu1 }
 0x198   : > { %1450 = vst.msk [vmem:[%s2900_s24 + $0x20] sm:$0xf] %vm1441_vm0, %v1788_v41  ;;  %1482 = vst.msk [vmem:[%s2900_s24 + $0xa0] sm:$0xf] %vm1441_vm0, %v1820_v44  ;;  %v1789_v12 = vpack.c.bf16 %v965_v61, %v965_v61  ;;  %v1821_v14 = vpack.c.bf16 %v1093_v10, %v1093_v10  ;;  %v967_v63 = vpop.f32.mrb[19].mxu0  ;;  %v1095_v62 = vpop.f32.mrb[19].mxu1 }
 0x19a   : > { %1451 = vst.msk [vmem:[%s2900_s24 + $0x24] sm:$0xf] %vm1441_vm0, %v1789_v12  ;;  %1483 = vst.msk [vmem:[%s2900_s24 + $0xa4] sm:$0xf] %vm1441_vm0, %v1821_v14 }
 0x19d   : > { %v970_v59 = vpop.f32.mrb[20].mxu0  ;;  %v1098_v36 = vpop.f32.mrb[20].mxu1 }
 0x19e   : > { %v1790_v42 = vpack.c.bf16 %v970_v59, %v970_v59  ;;  %v1822_v43 = vpack.c.bf16 %v1098_v36, %v1098_v36  ;;  %v972_v0 = vpop.f32.mrb[21].mxu0  ;;  %v1100_v19 = vpop.f32.mrb[21].mxu1 }
 0x19f   : > { %v973_v20 = vpop.f32.mrb[22].mxu0  ;;  %v1101_v6 = vpop.f32.mrb[22].mxu1 }
 0x1a0   : > { %1452 = vst.msk [vmem:[%s2900_s24 + $0x28] sm:$0xf] %vm1441_vm0, %v1790_v42  ;;  %1484 = vst.msk [vmem:[%s2900_s24 + $0xa8] sm:$0xf] %vm1441_vm0, %v1822_v43  ;;  %v1791_v57 = vpack.c.bf16 %v973_v20, %v973_v20  ;;  %v1823_v15 = vpack.c.bf16 %v1101_v6, %v1101_v6  ;;  %v975_v21 = vpop.f32.mrb[23].mxu0  ;;  %v1103_v22 = vpop.f32.mrb[23].mxu1 }
 0x1a2   : > { %1453 = vst.msk [vmem:[%s2900_s24 + $0x2c] sm:$0xf] %vm1441_vm0, %v1791_v57  ;;  %1485 = vst.msk [vmem:[%s2900_s24 + $0xac] sm:$0xf] %vm1441_vm0, %v1823_v15 }
 0x1a5   : > { %v978_v39 = vpop.f32.mrb[24].mxu0  ;;  %v1106_v37 = vpop.f32.mrb[24].mxu1 }
 0x1a6   : > { %v1792_v40 = vpack.c.bf16 %v978_v39, %v978_v39  ;;  %v1824_v28 = vpack.c.bf16 %v1106_v37, %v1106_v37  ;;  %v980_v23 = vpop.f32.mrb[25].mxu0  ;;  %v1108_v47 = vpop.f32.mrb[25].mxu1 }
 0x1a7   : > { %v981_v48 = vpop.f32.mrb[26].mxu0  ;;  %v1109_v56 = vpop.f32.mrb[26].mxu1 }
 0x1a8   : > { %1454 = vst.msk [vmem:[%s2900_s24 + $0x30] sm:$0xf] %vm1441_vm0, %v1792_v40  ;;  %1486 = vst.msk [vmem:[%s2900_s24 + $0xb0] sm:$0xf] %vm1441_vm0, %v1824_v28  ;;  %v1793_v55 = vpack.c.bf16 %v981_v48, %v981_v48  ;;  %v1825_v17 = vpack.c.bf16 %v1109_v56, %v1109_v56  ;;  %v983_v51 = vpop.f32.mrb[27].mxu0  ;;  %v1111_v52 = vpop.f32.mrb[27].mxu1 }
 0x1aa   : > { %1455 = vst.msk [vmem:[%s2900_s24 + $0x34] sm:$0xf] %vm1441_vm0, %v1793_v55  ;;  %1487 = vst.msk [vmem:[%s2900_s24 + $0xb4] sm:$0xf] %vm1441_vm0, %v1825_v17 }
 0x1ad   : > { %v986_v24 = vpop.f32.mrb[28].mxu0  ;;  %v1114_v3 = vpop.f32.mrb[28].mxu1 }
 0x1ae   : > { %v1794_v31 = vpack.c.bf16 %v986_v24, %v986_v24  ;;  %v1826_v33 = vpack.c.bf16 %v1114_v3, %v1114_v3  ;;  %v988_v1 = vpop.f32.mrb[29].mxu0  ;;  %v1116_v38 = vpop.f32.mrb[29].mxu1 }
 0x1af   : > { %v989_v58 = vpop.f32.mrb[30].mxu0  ;;  %v1117_v18 = vpop.f32.mrb[30].mxu1 }
 0x1b0   : > { %1456 = vst.msk [vmem:[%s2900_s24 + $0x38] sm:$0xf] %vm1441_vm0, %v1794_v31  ;;  %1488 = vst.msk [vmem:[%s2900_s24 + $0xb8] sm:$0xf] %vm1441_vm0, %v1826_v33  ;;  %v1795_v9 = vpack.c.bf16 %v989_v58, %v989_v58  ;;  %v1827_v35 = vpack.c.bf16 %v1117_v18, %v1117_v18  ;;  %v991_v25 = vpop.f32.mrb[31].mxu0  ;;  %v1119_v46 = vpop.f32.mrb[31].mxu1 }
 0x1b2   : > { %1457 = vst.msk [vmem:[%s2900_s24 + $0x3c] sm:$0xf] %vm1441_vm0, %v1795_v9  ;;  %1489 = vst.msk [vmem:[%s2900_s24 + $0xbc] sm:$0xf] %vm1441_vm0, %v1827_v35 }
 0x1b5   : > { %v994_v8 = vpop.f32.mrb[32].mxu0  ;;  %v1122_v53 = vpop.f32.mrb[32].mxu1 }
 0x1b6   : > { %v1796_v60 = vpack.c.bf16 %v994_v8, %v994_v8  ;;  %v1828_v11 = vpack.c.bf16 %v1122_v53, %v1122_v53  ;;  %v996_v13 = vpop.f32.mrb[33].mxu0  ;;  %v1124_v4 = vpop.f32.mrb[33].mxu1 }
 0x1b7   : > { %v997_v30 = vpop.f32.mrb[34].mxu0  ;;  %v1125_v7 = vpop.f32.mrb[34].mxu1 }
 0x1b8   : > { %1458 = vst.msk [vmem:[%s2900_s24 + $0x40] sm:$0xf] %vm1441_vm0, %v1796_v60  ;;  %1490 = vst.msk [vmem:[%s2900_s24 + $0xc0] sm:$0xf] %vm1441_vm0, %v1828_v11  ;;  %v1797_v49 = vpack.c.bf16 %v997_v30, %v997_v30  ;;  %v1829_v54 = vpack.c.bf16 %v1125_v7, %v1125_v7  ;;  %v999_v2 = vpop.f32.mrb[35].mxu0  ;;  %v1127_v26 = vpop.f32.mrb[35].mxu1 }
 0x1ba   : > { %1459 = vst.msk [vmem:[%s2900_s24 + $0x44] sm:$0xf] %vm1441_vm0, %v1797_v49  ;;  %1491 = vst.msk [vmem:[%s2900_s24 + $0xc4] sm:$0xf] %vm1441_vm0, %v1829_v54 }
 0x1bd   : > { %v1002_v29 = vpop.f32.mrb[36].mxu0  ;;  %v1130_v32 = vpop.f32.mrb[36].mxu1 }
 0x1be   : > { %v1798_v34 = vpack.c.bf16 %v1002_v29, %v1002_v29  ;;  %v1830_v27 = vpack.c.bf16 %v1130_v32, %v1130_v32  ;;  %v1004_v5 = vpop.f32.mrb[37].mxu0  ;;  %v1132_v16 = vpop.f32.mrb[37].mxu1 }
 0x1bf   : > { %v1005_v41 = vpop.f32.mrb[38].mxu0  ;;  %v1133_v44 = vpop.f32.mrb[38].mxu1 }
 0x1c0   : > { %1460 = vst.msk [vmem:[%s2900_s24 + $0x48] sm:$0xf] %vm1441_vm0, %v1798_v34  ;;  %1492 = vst.msk [vmem:[%s2900_s24 + $0xc8] sm:$0xf] %vm1441_vm0, %v1830_v27  ;;  %v1799_v45 = vpack.c.bf16 %v1005_v41, %v1005_v41  ;;  %v1831_v50 = vpack.c.bf16 %v1133_v44, %v1133_v44  ;;  %v1007_v61 = vpop.f32.mrb[39].mxu0  ;;  %v1135_v10 = vpop.f32.mrb[39].mxu1 }
 0x1c2   : > { %1461 = vst.msk [vmem:[%s2900_s24 + $0x4c] sm:$0xf] %vm1441_vm0, %v1799_v45  ;;  %1493 = vst.msk [vmem:[%s2900_s24 + $0xcc] sm:$0xf] %vm1441_vm0, %v1831_v50 }
 0x1c5   : > { %v1010_v12 = vpop.f32.mrb[40].mxu0  ;;  %v1138_v14 = vpop.f32.mrb[40].mxu1 }
 0x1c6   : > { %v1800_v63 = vpack.c.bf16 %v1010_v12, %v1010_v12  ;;  %v1832_v62 = vpack.c.bf16 %v1138_v14, %v1138_v14  ;;  %v1012_v59 = vpop.f32.mrb[41].mxu0  ;;  %v1140_v36 = vpop.f32.mrb[41].mxu1 }
 0x1c7   : > { %v1013_v42 = vpop.f32.mrb[42].mxu0  ;;  %v1141_v43 = vpop.f32.mrb[42].mxu1 }
 0x1c8   : > { %1462 = vst.msk [vmem:[%s2900_s24 + $0x50] sm:$0xf] %vm1441_vm0, %v1800_v63  ;;  %1494 = vst.msk [vmem:[%s2900_s24 + $0xd0] sm:$0xf] %vm1441_vm0, %v1832_v62  ;;  %v1801_v0 = vpack.c.bf16 %v1013_v42, %v1013_v42  ;;  %v1833_v19 = vpack.c.bf16 %v1141_v43, %v1141_v43  ;;  %v1015_v20 = vpop.f32.mrb[43].mxu0  ;;  %v1143_v6 = vpop.f32.mrb[43].mxu1 }
 0x1ca   : > { %1463 = vst.msk [vmem:[%s2900_s24 + $0x54] sm:$0xf] %vm1441_vm0, %v1801_v0  ;;  %1495 = vst.msk [vmem:[%s2900_s24 + $0xd4] sm:$0xf] %vm1441_vm0, %v1833_v19 }
 0x1cd   : > { %v1018_v57 = vpop.f32.mrb[44].mxu0  ;;  %v1146_v15 = vpop.f32.mrb[44].mxu1 }
 0x1ce   : > { %v1802_v21 = vpack.c.bf16 %v1018_v57, %v1018_v57  ;;  %v1834_v22 = vpack.c.bf16 %v1146_v15, %v1146_v15  ;;  %v1020_v39 = vpop.f32.mrb[45].mxu0  ;;  %v1148_v37 = vpop.f32.mrb[45].mxu1 }
 0x1cf   : > { %v1021_v40 = vpop.f32.mrb[46].mxu0  ;;  %v1149_v28 = vpop.f32.mrb[46].mxu1 }
 0x1d0   : > { %1464 = vst.msk [vmem:[%s2900_s24 + $0x58] sm:$0xf] %vm1441_vm0, %v1802_v21  ;;  %1496 = vst.msk [vmem:[%s2900_s24 + $0xd8] sm:$0xf] %vm1441_vm0, %v1834_v22  ;;  %v1803_v23 = vpack.c.bf16 %v1021_v40, %v1021_v40  ;;  %v1835_v47 = vpack.c.bf16 %v1149_v28, %v1149_v28  ;;  %v1023_v48 = vpop.f32.mrb[47].mxu0  ;;  %v1151_v56 = vpop.f32.mrb[47].mxu1 }
 0x1d2   : > { %1465 = vst.msk [vmem:[%s2900_s24 + $0x5c] sm:$0xf] %vm1441_vm0, %v1803_v23  ;;  %1497 = vst.msk [vmem:[%s2900_s24 + $0xdc] sm:$0xf] %vm1441_vm0, %v1835_v47 }
 0x1d5   : > { %v1026_v55 = vpop.f32.mrb[48].mxu0  ;;  %v1154_v17 = vpop.f32.mrb[48].mxu1 }
 0x1d6   : > { %v1804_v51 = vpack.c.bf16 %v1026_v55, %v1026_v55  ;;  %v1836_v52 = vpack.c.bf16 %v1154_v17, %v1154_v17  ;;  %v1028_v24 = vpop.f32.mrb[49].mxu0  ;;  %v1156_v3 = vpop.f32.mrb[49].mxu1 }
 0x1d7   : > { %v1029_v31 = vpop.f32.mrb[50].mxu0  ;;  %v1157_v33 = vpop.f32.mrb[50].mxu1 }
 0x1d8   : > { %1466 = vst.msk [vmem:[%s2900_s24 + $0x60] sm:$0xf] %vm1441_vm0, %v1804_v51  ;;  %1498 = vst.msk [vmem:[%s2900_s24 + $0xe0] sm:$0xf] %vm1441_vm0, %v1836_v52  ;;  %v1805_v1 = vpack.c.bf16 %v1029_v31, %v1029_v31  ;;  %v1837_v38 = vpack.c.bf16 %v1157_v33, %v1157_v33  ;;  %v1031_v58 = vpop.f32.mrb[51].mxu0  ;;  %v1159_v18 = vpop.f32.mrb[51].mxu1 }
 0x1da   : > { %1467 = vst.msk [vmem:[%s2900_s24 + $0x64] sm:$0xf] %vm1441_vm0, %v1805_v1  ;;  %1499 = vst.msk [vmem:[%s2900_s24 + $0xe4] sm:$0xf] %vm1441_vm0, %v1837_v38 }
 0x1dd   : > { %v1034_v9 = vpop.f32.mrb[52].mxu0  ;;  %v1162_v35 = vpop.f32.mrb[52].mxu1 }
 0x1de   : > { %v1806_v25 = vpack.c.bf16 %v1034_v9, %v1034_v9  ;;  %v1838_v46 = vpack.c.bf16 %v1162_v35, %v1162_v35  ;;  %v1036_v8 = vpop.f32.mrb[53].mxu0  ;;  %v1164_v53 = vpop.f32.mrb[53].mxu1 }
 0x1df   : > { %v1037_v60 = vpop.f32.mrb[54].mxu0  ;;  %v1165_v11 = vpop.f32.mrb[54].mxu1 }
 0x1e0   : > { %1468 = vst.msk [vmem:[%s2900_s24 + $0x68] sm:$0xf] %vm1441_vm0, %v1806_v25  ;;  %1500 = vst.msk [vmem:[%s2900_s24 + $0xe8] sm:$0xf] %vm1441_vm0, %v1838_v46  ;;  %v1807_v13 = vpack.c.bf16 %v1037_v60, %v1037_v60  ;;  %v1839_v4 = vpack.c.bf16 %v1165_v11, %v1165_v11  ;;  %v1039_v30 = vpop.f32.mrb[55].mxu0  ;;  %v1167_v7 = vpop.f32.mrb[55].mxu1 }
 0x1e2   : > { %1469 = vst.msk [vmem:[%s2900_s24 + $0x6c] sm:$0xf] %vm1441_vm0, %v1807_v13  ;;  %1501 = vst.msk [vmem:[%s2900_s24 + $0xec] sm:$0xf] %vm1441_vm0, %v1839_v4 }
 0x1e5   : > { %v1042_v49 = vpop.f32.mrb[56].mxu0  ;;  %v1170_v54 = vpop.f32.mrb[56].mxu1 }
 0x1e6   : > { %v1808_v2 = vpack.c.bf16 %v1042_v49, %v1042_v49  ;;  %v1840_v26 = vpack.c.bf16 %v1170_v54, %v1170_v54  ;;  %v1044_v29 = vpop.f32.mrb[57].mxu0  ;;  %v1172_v32 = vpop.f32.mrb[57].mxu1 }
 0x1e7   : > { %v1045_v34 = vpop.f32.mrb[58].mxu0  ;;  %v1173_v27 = vpop.f32.mrb[58].mxu1 }
 0x1e8   : > { %1470 = vst.msk [vmem:[%s2900_s24 + $0x70] sm:$0xf] %vm1441_vm0, %v1808_v2  ;;  %1502 = vst.msk [vmem:[%s2900_s24 + $0xf0] sm:$0xf] %vm1441_vm0, %v1840_v26  ;;  %v1809_v5 = vpack.c.bf16 %v1045_v34, %v1045_v34  ;;  %v1841_v16 = vpack.c.bf16 %v1173_v27, %v1173_v27  ;;  %v1047_v41 = vpop.f32.mrb[59].mxu0  ;;  %v1175_v44 = vpop.f32.mrb[59].mxu1 }
 0x1ea   : > { %1471 = vst.msk [vmem:[%s2900_s24 + $0x74] sm:$0xf] %vm1441_vm0, %v1809_v5  ;;  %1503 = vst.msk [vmem:[%s2900_s24 + $0xf4] sm:$0xf] %vm1441_vm0, %v1841_v16 }
 0x1ed   : > { %v1050_v45 = vpop.f32.mrb[60].mxu0  ;;  %v1178_v50 = vpop.f32.mrb[60].mxu1 }
 0x1ee   : > { %v1810_v61 = vpack.c.bf16 %v1050_v45, %v1050_v45  ;;  %v1842_v10 = vpack.c.bf16 %v1178_v50, %v1178_v50  ;;  %v1052_v12 = vpop.f32.mrb[61].mxu0  ;;  %v1180_v14 = vpop.f32.mrb[61].mxu1 }
 0x1ef   : > { %v1053_v63 = vpop.f32.mrb[62].mxu0  ;;  %v1181_v62 = vpop.f32.mrb[62].mxu1 }
 0x1f0   : > { %1472 = vst.msk [vmem:[%s2900_s24 + $0x78] sm:$0xf] %vm1441_vm0, %v1810_v61  ;;  %1504 = vst.msk [vmem:[%s2900_s24 + $0xf8] sm:$0xf] %vm1441_vm0, %v1842_v10  ;;  %v1811_v59 = vpack.c.bf16 %v1053_v63, %v1053_v63  ;;  %v1843_v36 = vpack.c.bf16 %v1181_v62, %v1181_v62  ;;  %v1055_v42 = vpop.f32.mrb[63].mxu0  ;;  %v1183_v43 = vpop.f32.mrb[63].mxu1 }
 0x1f2   : > { %1473 = vst.msk [vmem:[%s2900_s24 + $0x7c] sm:$0xf] %vm1441_vm0, %v1811_v59  ;;  %1505 = vst.msk [vmem:[%s2900_s24 + $0xfc] sm:$0xf] %vm1441_vm0, %v1843_v36 }
 0x1f3 PF: > { %s12_s9 = sadd.s32 1, %s1908_s9  }
 0x1f4   : > { %p9_p4 = scmp.ge.s32.totalorder %s12_s9, 4  }
 0x1f6   :  { %11 = sbr.rel (!%p9_p4) target bundleno = 1 (0x1), region = 58 }

</bundles_post_ra>
